<compile_context>
chip_gen: v7x
topology: tpu7x:2x2x1
jax: 0.10.0
libtpu: 0.0.40
codegen_flags: <defaults>
</compile_context>

<pallas_src>
import functools

import numpy as np

import jax
import jax.numpy as jnp
from jax.experimental import pallas as pl
from jax.experimental.pallas import tpu as pltpu

D_MODEL = 32
N_HEADS = 4
D_K = D_MODEL // N_HEADS
D_FF = 64
EPS = 1e-6

_P_LANES = 96          # lane-dense packed-parameter width (bqkv needs 3*D = 96)
_W_ROWS = 3 * D_MODEL + D_FF   # 160 row-stacked weight rows
_W_LANES = 96          # widest weight matrix (fused QKV) needs 96 lanes


def _layernorm(x, a, b):
    # Matches the reference LayerNorm exactly:
    #   mean over last dim; torch.std (unbiased, ddof=1); a*(x-mean)/(std+eps)+b
    d = x.shape[-1]
    mean = jnp.mean(x, axis=-1, keepdims=True)
    var = jnp.sum((x - mean) ** 2, axis=-1, keepdims=True) * (1.0 / (d - 1))
    std = jnp.sqrt(var)
    # Exact divide kept (approx reciprocal would risk the 1e-4 reference parity;
    # the divide is on an (R,1) column and is negligible here).
    return a * (x - mean) / (std + EPS) + b


def encoder_layer_kernel(x_ref, p_ref, w_ref, out_ref, *, bc, s):
    D, FF = D_MODEL, D_FF
    x = x_ref[...].astype(jnp.float32)                      # (bc*s, D)

    # packed small params: one row each, lanes [0:width)
    a1 = p_ref[0:1, :D]
    b1 = p_ref[1:2, :D]
    a2 = p_ref[2:3, :D]
    b2 = p_ref[3:4, :D]
    bqkv = p_ref[4:5, :3 * D]        # [bq*scale | bk | bv]
    bo = p_ref[5:6, :D]
    bf1 = p_ref[6:7, :FF]
    bf2 = p_ref[7:8, :D]

    # packed weights: row-stacked, all slices 8-sublane aligned, lane offset 0
    wqkv = w_ref[0:D, :3 * D]                               # (D, 3D)  [Wq*scale|Wk|Wv]
    wo = w_ref[D:2 * D, :D]                                 # (D, D)
    w1 = w_ref[2 * D:3 * D, :FF]                            # (D, FF)
    w2 = w_ref[3 * D:3 * D + FF, :D]                        # (FF, D)

    # ---- sublayer 0: x + self_attn(norm(x)) ----
    y = _layernorm(x, a1, b1)
    qkv = jnp.dot(y, wqkv, preferred_element_type=jnp.float32) + bqkv   # (bc*s, 3D)

    per_batch = []
    for b in range(bc):                                     # static loops
        rows = slice(b * s, (b + 1) * s)
        heads = []
        for h in range(N_HEADS):
            qh = qkv[rows, h * D_K:(h + 1) * D_K]                       # (s, D_K) (pre-scaled)
            kh = qkv[rows, D + h * D_K:D + (h + 1) * D_K]               # (s, D_K)
            vh = qkv[rows, 2 * D + h * D_K:2 * D + (h + 1) * D_K]       # (s, D_K)
            # q @ k^T via NT dot_general -- no explicit XLU transpose.
            sc = jax.lax.dot_general(
                qh, kh, (((1,), (1,)), ((), ())),
                preferred_element_type=jnp.float32)                     # (s, s)
            sc = sc - jnp.max(sc, axis=-1, keepdims=True)
            p = jnp.exp(sc)
            p = p / jnp.sum(p, axis=-1, keepdims=True)
            heads.append(jnp.dot(p, vh, preferred_element_type=jnp.float32))  # (s, D_K)
        # lane-concat the heads (cheap XLU work the MXU doesn't use) ...
        per_batch.append(jnp.concatenate(heads, axis=1))                # (s, D)
    o = per_batch[0] if bc == 1 else jnp.concatenate(per_batch, axis=0)  # (rows, D)
    # ... so the output projection is a single MXU push instead of 8 tiny ones.
    attn = jnp.dot(o, wo, preferred_element_type=jnp.float32) + bo
    x = x + attn                                            # residual

    # ---- sublayer 1: x + feed_forward(norm(x)) ----
    y2 = _layernorm(x, a2, b2)
    h1 = jnp.maximum(jnp.dot(y2, w1, preferred_element_type=jnp.float32) + bf1, 0.0)
    ff = jnp.dot(h1, w2, preferred_element_type=jnp.float32) + bf2
    out_ref[...] = (x + ff).astype(out_ref.dtype)


def _grid_steps(batch, seq):
    """Number of grid steps (blocks split along the batch axis only).

    - Keep per-step row blocks <= ~512 rows so the pipeline has headroom if
      shapes grow (attention needs a whole sequence per block, so the split is
      batch-granular).
    - Engage the v7x 2-TensorCore "parallel" split only when each core gets at
      least ~64 rows of real work; otherwise the duplicated weight DMA and
      per-step overhead make it a wash or a loss.
    """
    kind = ""
    try:
        kind = jax.devices()[0].device_kind.lower()
    except Exception:
        pass
    n_tc = 2 if "v7" in kind else 1

    divisors = [d for d in range(1, batch + 1) if batch % d == 0]
    steps = next((d for d in divisors if (batch // d) * seq <= 512), batch)
    if n_tc > 1 and steps < n_tc and (batch * seq) // n_tc >= 64:
        cand = [d for d in divisors if d >= n_tc]
        if cand:
            steps = cand[0]
    return steps


def pack_encoder_params(params):
    """One-time host-side packing (numpy) -> (p_small, w_all) device arrays.

    The attention scale 1/sqrt(D_K) is folded into the Q third of the fused
    QKV weight and bias so the kernel never multiplies scores by it.
    """
    (a1, b1, a2, b2, wq, bq, wk, bk, wv, bv, wo, bo, w1, bf1, w2, bf2) = (
        np.asarray(p, np.float32) for p in params)
    D, FF = D_MODEL, D_FF
    scale = np.float32(D_K ** -0.5)

    # Small vectors -> one (8, 96) f32 array, one parameter per row (lane 0..).
    p = np.zeros((8, _P_LANES), np.float32)
    p[0, :D] = a1.reshape(-1)
    p[1, :D] = b1.reshape(-1)
    p[2, :D] = a2.reshape(-1)
    p[3, :D] = b2.reshape(-1)
    p[4, :3 * D] = np.concatenate(
        [bq.reshape(-1) * scale, bk.reshape(-1), bv.reshape(-1)])
    p[5, :D] = bo.reshape(-1)
    p[6, :FF] = bf1.reshape(-1)
    p[7, :D] = bf2.reshape(-1)

    # Weight matrices -> one (160, 96) f32 array, row-stacked, lane offset 0.
    w = np.zeros((_W_ROWS, _W_LANES), np.float32)
    w[0:D, :3 * D] = np.concatenate([wq * scale, wk, wv], axis=1)   # fused QKV
    w[D:2 * D, :D] = wo
    w[2 * D:3 * D, :FF] = w1
    w[3 * D:3 * D + FF, :D] = w2
    return jnp.asarray(p), jnp.asarray(w)


@functools.partial(jax.jit, static_argnums=(3,))
def _encoder_layer_call(x, p_small, w_all, steps):
    B, S, D = x.shape
    bc = B // steps                   # batches folded into sublanes per step
    rows = bc * S
    x2 = x.reshape(B * S, D)          # fold batch into the sublane dim (free)

    kernel = functools.partial(encoder_layer_kernel, bc=bc, s=S)
    out2 = pl.pallas_call(
        kernel,
        out_shape=jax.ShapeDtypeStruct((B * S, D), x.dtype),
        grid_spec=pltpu.PrefetchScalarGridSpec(
            num_scalar_prefetch=0,
            grid=(steps,),
            in_specs=[
                pl.BlockSpec((rows, D), lambda i: (i, 0)),       # x rows
                pl.BlockSpec(p_small.shape, lambda i: (0, 0)),   # packed biases/LN
                pl.BlockSpec(w_all.shape, lambda i: (0, 0)),     # packed weights
            ],
            out_specs=pl.BlockSpec((rows, D), lambda i: (i, 0)),
        ),
        compiler_params=pltpu.CompilerParams(
            dimension_semantics=("parallel",)),
    )(x2, p_small, w_all)
    return out2.reshape(B, S, D)


def encoder_layer(x, packed_params):
    """x: (B, S, D_MODEL); packed_params: output of pack_encoder_params()."""
    B, S, D = x.shape
    assert D == D_MODEL
    p_small, w_all = packed_params
    steps = _grid_steps(B, S)
    return _encoder_layer_call(x, p_small, w_all, steps)


def reference_encoder_layer(x, params):
    (a1, b1, a2, b2, wq, bq, wk, bk, wv, bv, wo, bo, w1, bf1, w2, bf2) = params
    x = x.astype(jnp.float32)

    def ln(x, a, b):
        d = x.shape[-1]
        mean = jnp.mean(x, axis=-1, keepdims=True)
        var = jnp.sum((x - mean) ** 2, axis=-1, keepdims=True) / (d - 1)
        return a * (x - mean) / (jnp.sqrt(var) + EPS) + b

    y = ln(x, a1, b1)
    q = y @ wq + bq
    k = y @ wk + bk
    v = y @ wv + bv
    B, S, D = x.shape
    qh = q.reshape(B, S, N_HEADS, D_K).transpose(0, 2, 1, 3)
    kh = k.reshape(B, S, N_HEADS, D_K).transpose(0, 2, 1, 3)
    vh = v.reshape(B, S, N_HEADS, D_K).transpose(0, 2, 1, 3)
    scores = jnp.einsum("bhqd,bhkd->bhqk", qh, kh) / jnp.sqrt(jnp.float32(D_K))
    p = jax.nn.softmax(scores, axis=-1)
    o = jnp.einsum("bhqk,bhkd->bhqd", p, vh).transpose(0, 2, 1, 3).reshape(B, S, D)
    x = x + (o @ wo + bo)
    y2 = ln(x, a2, b2)
    ff = jnp.maximum(y2 @ w1 + bf1, 0.0) @ w2 + bf2
    return x + ff


def make_params(key):
    ks = jax.random.split(key, 8)
    f32 = jnp.float32
    a1 = jnp.ones((1, D_MODEL), f32)
    b1 = jnp.zeros((1, D_MODEL), f32)
    a2 = jnp.ones((1, D_MODEL), f32)
    b2 = jnp.zeros((1, D_MODEL), f32)
    wq = 0.1 * jax.random.normal(ks[0], (D_MODEL, D_MODEL), f32)
    wk = 0.1 * jax.random.normal(ks[1], (D_MODEL, D_MODEL), f32)
    wv = 0.1 * jax.random.normal(ks[2], (D_MODEL, D_MODEL), f32)
    wo = 0.1 * jax.random.normal(ks[3], (D_MODEL, D_MODEL), f32)
    bq = jnp.zeros((1, D_MODEL), f32)
    bk = jnp.zeros((1, D_MODEL), f32)
    bv = jnp.zeros((1, D_MODEL), f32)
    bo = jnp.zeros((1, D_MODEL), f32)
    w1 = 0.1 * jax.random.normal(ks[4], (D_MODEL, D_FF), f32)
    bf1 = 0.01 * jax.random.normal(ks[5], (1, D_FF), f32)
    w2 = 0.1 * jax.random.normal(ks[6], (D_FF, D_MODEL), f32)
    bf2 = 0.01 * jax.random.normal(ks[7], (1, D_MODEL), f32)
    return (a1, b1, a2, b2, wq, bq, wk, bk, wv, bv, wo, bo, w1, bf1, w2, bf2)


if __name__ == "__main__":
    B, S = 2, 8
    key = jax.random.PRNGKey(0)
    kx, kp = jax.random.split(key)
    x = jax.random.normal(kx, (B, S, D_MODEL), jnp.float32)
    params = make_params(kp)

    # One-time packing (out of the hot path); subsequent calls reuse it.
    packed = pack_encoder_params(params)

    out = encoder_layer(x, packed)
    out = jax.block_until_ready(out)

    ref = reference_encoder_layer(x, params)
    assert out.shape == (B, S, D_MODEL)
    assert jnp.allclose(out, ref, atol=1e-4, rtol=1e-4), "mismatch vs reference"
    print("KERNEL_OK")
</pallas_src>

<mosaic_0001>
module attributes {stable_mosaic.version = 11 : i64} {
  func.func @encoder_layer_kernel(%arg0: i32, %arg1: memref<16x32xf32, #tpu.memory_space<vmem>>, %arg2: memref<8x96xf32, #tpu.memory_space<vmem>>, %arg3: memref<160x96xf32, #tpu.memory_space<vmem>>, %arg4: memref<16x32xf32, #tpu.memory_space<vmem>>) attributes {dimension_semantics = [#tpu.dimension_semantics<parallel>], iteration_bounds = array<i64: 1>, scalar_prefetch = 0 : i64, scratch_operands = 0 : i64, tpu.core_type = #tpu.core_type<tc>, window_params = [{transform_indices = @transform_0, window_bounds = array<i64: 16, 32>}, {pipeline_mode = #tpu.pipeline_mode<synchronous>, transform_indices = @transform_1, window_bounds = array<i64: 8, 96>}, {pipeline_mode = #tpu.pipeline_mode<synchronous>, transform_indices = @transform_2, window_bounds = array<i64: 160, 96>}, {transform_indices = @transform_3, window_bounds = array<i64: 16, 32>}]} {
    %c0 = arith.constant 0 : index
    %c0_0 = arith.constant 0 : index
    %0 = vector.load %arg1[%c0, %c0_0] : memref<16x32xf32, #tpu.memory_space<vmem>>, vector<16x32xf32>
    %c0_1 = arith.constant 0 : index
    %c0_2 = arith.constant 0 : index
    %1 = vector.load %arg2[%c0_1, %c0_2] : memref<8x96xf32, #tpu.memory_space<vmem>>, vector<1x32xf32>
    %c1 = arith.constant 1 : index
    %c0_3 = arith.constant 0 : index
    %2 = vector.load %arg2[%c1, %c0_3] : memref<8x96xf32, #tpu.memory_space<vmem>>, vector<1x32xf32>
    %c2 = arith.constant 2 : index
    %c0_4 = arith.constant 0 : index
    %3 = vector.load %arg2[%c2, %c0_4] : memref<8x96xf32, #tpu.memory_space<vmem>>, vector<1x32xf32>
    %c3 = arith.constant 3 : index
    %c0_5 = arith.constant 0 : index
    %4 = vector.load %arg2[%c3, %c0_5] : memref<8x96xf32, #tpu.memory_space<vmem>>, vector<1x32xf32>
    %c4 = arith.constant 4 : index
    %c0_6 = arith.constant 0 : index
    %5 = vector.load %arg2[%c4, %c0_6] : memref<8x96xf32, #tpu.memory_space<vmem>>, vector<1x96xf32>
    %c5 = arith.constant 5 : index
    %c0_7 = arith.constant 0 : index
    %6 = vector.load %arg2[%c5, %c0_7] : memref<8x96xf32, #tpu.memory_space<vmem>>, vector<1x32xf32>
    %c6 = arith.constant 6 : index
    %c0_8 = arith.constant 0 : index
    %7 = vector.load %arg2[%c6, %c0_8] : memref<8x96xf32, #tpu.memory_space<vmem>>, vector<1x64xf32>
    %c7 = arith.constant 7 : index
    %c0_9 = arith.constant 0 : index
    %8 = vector.load %arg2[%c7, %c0_9] : memref<8x96xf32, #tpu.memory_space<vmem>>, vector<1x32xf32>
    %c0_10 = arith.constant 0 : index
    %c0_11 = arith.constant 0 : index
    %9 = vector.load %arg3[%c0_10, %c0_11] : memref<160x96xf32, #tpu.memory_space<vmem>>, vector<32x96xf32>
    %c32 = arith.constant 32 : index
    %c0_12 = arith.constant 0 : index
    %10 = vector.load %arg3[%c32, %c0_12] : memref<160x96xf32, #tpu.memory_space<vmem>>, vector<32x32xf32>
    %c64 = arith.constant 64 : index
    %c0_13 = arith.constant 0 : index
    %11 = vector.load %arg3[%c64, %c0_13] : memref<160x96xf32, #tpu.memory_space<vmem>>, vector<32x64xf32>
    %c96 = arith.constant 96 : index
    %c0_14 = arith.constant 0 : index
    %12 = vector.load %arg3[%c96, %c0_14] : memref<160x96xf32, #tpu.memory_space<vmem>>, vector<64x32xf32>
    %cst = arith.constant dense<0.000000e+00> : vector<16xf32>
    %13 = vector.multi_reduction <add>, %0, %cst [1] : vector<16x32xf32> to vector<16xf32>
    %14 = vector.shape_cast %13 : vector<16xf32> to vector<16x1xf32>
    %cst_15 = arith.constant 3.200000e+01 : f32
    %15 = vector.broadcast %cst_15 : f32 to vector<16x1xf32>
    %16 = arith.divf %14, %15 : vector<16x1xf32>
    %17 = vector.broadcast %16 : vector<16x1xf32> to vector<16x32xf32>
    %18 = arith.subf %0, %17 : vector<16x32xf32>
    %19 = arith.mulf %18, %18 : vector<16x32xf32>
    %cst_16 = arith.constant dense<0.000000e+00> : vector<16xf32>
    %20 = vector.multi_reduction <add>, %19, %cst_16 [1] : vector<16x32xf32> to vector<16xf32>
    %21 = vector.shape_cast %20 : vector<16xf32> to vector<16x1xf32>
    %cst_17 = arith.constant 0.0322580636 : f32
    %22 = vector.broadcast %cst_17 : f32 to vector<16x1xf32>
    %23 = arith.mulf %21, %22 : vector<16x1xf32>
    %24 = math.sqrt %23 : vector<16x1xf32>
    %25 = vector.broadcast %16 : vector<16x1xf32> to vector<16x32xf32>
    %26 = arith.subf %0, %25 : vector<16x32xf32>
    %27 = vector.broadcast %1 : vector<1x32xf32> to vector<16x32xf32>
    %28 = arith.mulf %27, %26 : vector<16x32xf32>
    %cst_18 = arith.constant 9.99999997E-7 : f32
    %29 = vector.broadcast %cst_18 : f32 to vector<16x1xf32>
    %30 = arith.addf %24, %29 : vector<16x1xf32>
    %31 = vector.broadcast %30 : vector<16x1xf32> to vector<16x32xf32>
    %32 = arith.divf %28, %31 : vector<16x32xf32>
    %33 = vector.broadcast %2 : vector<1x32xf32> to vector<16x32xf32>
    %34 = arith.addf %32, %33 : vector<16x32xf32>
    %cst_19 = arith.constant dense<0.000000e+00> : vector<16x96xf32>
    %35 = tpu.matmul %34, %9, %cst_19 {dimension_numbers = #tpu.dot_dimension_numbers<[1], [0], [0], [1], [0, 0, 1, 1], [], []>} : vector<16x32xf32>, vector<32x96xf32>, vector<16x96xf32> -> vector<16x96xf32>
    %36 = vector.broadcast %5 : vector<1x96xf32> to vector<16x96xf32>
    %37 = arith.addf %35, %36 : vector<16x96xf32>
    %38 = vector.extract_strided_slice %37 {offsets = [0, 0], sizes = [8, 8], strides = [1, 1]} : vector<16x96xf32> to vector<8x8xf32>
    %39 = vector.extract_strided_slice %37 {offsets = [0, 32], sizes = [8, 8], strides = [1, 1]} : vector<16x96xf32> to vector<8x8xf32>
    %40 = vector.extract_strided_slice %37 {offsets = [0, 64], sizes = [8, 8], strides = [1, 1]} : vector<16x96xf32> to vector<8x8xf32>
    %cst_20 = arith.constant dense<0.000000e+00> : vector<8x8xf32>
    %41 = tpu.matmul %38, %39, %cst_20 {dimension_numbers = #tpu.dot_dimension_numbers<[1], [1], [0], [0], [0, 0, 1, 0], [], []>} : vector<8x8xf32>, vector<8x8xf32>, vector<8x8xf32> -> vector<8x8xf32>
    %cst_21 = arith.constant dense<0xFF800000> : vector<8xf32>
    %42 = vector.multi_reduction <maximumf>, %41, %cst_21 [1] : vector<8x8xf32> to vector<8xf32>
    %43 = vector.shape_cast %42 : vector<8xf32> to vector<8x1xf32>
    %44 = vector.broadcast %43 : vector<8x1xf32> to vector<8x8xf32>
    %45 = arith.subf %41, %44 : vector<8x8xf32>
    %46 = math.exp %45 : vector<8x8xf32>
    %cst_22 = arith.constant dense<0.000000e+00> : vector<8xf32>
    %47 = vector.multi_reduction <add>, %46, %cst_22 [1] : vector<8x8xf32> to vector<8xf32>
    %48 = vector.shape_cast %47 : vector<8xf32> to vector<8x1xf32>
    %49 = vector.broadcast %48 : vector<8x1xf32> to vector<8x8xf32>
    %50 = arith.divf %46, %49 : vector<8x8xf32>
    %cst_23 = arith.constant dense<0.000000e+00> : vector<8x8xf32>
    %51 = tpu.matmul %50, %40, %cst_23 {dimension_numbers = #tpu.dot_dimension_numbers<[1], [0], [0], [1], [0, 0, 1, 1], [], []>} : vector<8x8xf32>, vector<8x8xf32>, vector<8x8xf32> -> vector<8x8xf32>
    %52 = vector.extract_strided_slice %37 {offsets = [0, 8], sizes = [8, 8], strides = [1, 1]} : vector<16x96xf32> to vector<8x8xf32>
    %53 = vector.extract_strided_slice %37 {offsets = [0, 40], sizes = [8, 8], strides = [1, 1]} : vector<16x96xf32> to vector<8x8xf32>
    %54 = vector.extract_strided_slice %37 {offsets = [0, 72], sizes = [8, 8], strides = [1, 1]} : vector<16x96xf32> to vector<8x8xf32>
    %cst_24 = arith.constant dense<0.000000e+00> : vector<8x8xf32>
    %55 = tpu.matmul %52, %53, %cst_24 {dimension_numbers = #tpu.dot_dimension_numbers<[1], [1], [0], [0], [0, 0, 1, 0], [], []>} : vector<8x8xf32>, vector<8x8xf32>, vector<8x8xf32> -> vector<8x8xf32>
    %cst_25 = arith.constant dense<0xFF800000> : vector<8xf32>
    %56 = vector.multi_reduction <maximumf>, %55, %cst_25 [1] : vector<8x8xf32> to vector<8xf32>
    %57 = vector.shape_cast %56 : vector<8xf32> to vector<8x1xf32>
    %58 = vector.broadcast %57 : vector<8x1xf32> to vector<8x8xf32>
    %59 = arith.subf %55, %58 : vector<8x8xf32>
    %60 = math.exp %59 : vector<8x8xf32>
    %cst_26 = arith.constant dense<0.000000e+00> : vector<8xf32>
    %61 = vector.multi_reduction <add>, %60, %cst_26 [1] : vector<8x8xf32> to vector<8xf32>
    %62 = vector.shape_cast %61 : vector<8xf32> to vector<8x1xf32>
    %63 = vector.broadcast %62 : vector<8x1xf32> to vector<8x8xf32>
    %64 = arith.divf %60, %63 : vector<8x8xf32>
    %cst_27 = arith.constant dense<0.000000e+00> : vector<8x8xf32>
    %65 = tpu.matmul %64, %54, %cst_27 {dimension_numbers = #tpu.dot_dimension_numbers<[1], [0], [0], [1], [0, 0, 1, 1], [], []>} : vector<8x8xf32>, vector<8x8xf32>, vector<8x8xf32> -> vector<8x8xf32>
    %66 = vector.extract_strided_slice %37 {offsets = [0, 16], sizes = [8, 8], strides = [1, 1]} : vector<16x96xf32> to vector<8x8xf32>
    %67 = vector.extract_strided_slice %37 {offsets = [0, 48], sizes = [8, 8], strides = [1, 1]} : vector<16x96xf32> to vector<8x8xf32>
    %68 = vector.extract_strided_slice %37 {offsets = [0, 80], sizes = [8, 8], strides = [1, 1]} : vector<16x96xf32> to vector<8x8xf32>
    %cst_28 = arith.constant dense<0.000000e+00> : vector<8x8xf32>
    %69 = tpu.matmul %66, %67, %cst_28 {dimension_numbers = #tpu.dot_dimension_numbers<[1], [1], [0], [0], [0, 0, 1, 0], [], []>} : vector<8x8xf32>, vector<8x8xf32>, vector<8x8xf32> -> vector<8x8xf32>
    %cst_29 = arith.constant dense<0xFF800000> : vector<8xf32>
    %70 = vector.multi_reduction <maximumf>, %69, %cst_29 [1] : vector<8x8xf32> to vector<8xf32>
    %71 = vector.shape_cast %70 : vector<8xf32> to vector<8x1xf32>
    %72 = vector.broadcast %71 : vector<8x1xf32> to vector<8x8xf32>
    %73 = arith.subf %69, %72 : vector<8x8xf32>
    %74 = math.exp %73 : vector<8x8xf32>
    %cst_30 = arith.constant dense<0.000000e+00> : vector<8xf32>
    %75 = vector.multi_reduction <add>, %74, %cst_30 [1] : vector<8x8xf32> to vector<8xf32>
    %76 = vector.shape_cast %75 : vector<8xf32> to vector<8x1xf32>
    %77 = vector.broadcast %76 : vector<8x1xf32> to vector<8x8xf32>
    %78 = arith.divf %74, %77 : vector<8x8xf32>
    %cst_31 = arith.constant dense<0.000000e+00> : vector<8x8xf32>
    %79 = tpu.matmul %78, %68, %cst_31 {dimension_numbers = #tpu.dot_dimension_numbers<[1], [0], [0], [1], [0, 0, 1, 1], [], []>} : vector<8x8xf32>, vector<8x8xf32>, vector<8x8xf32> -> vector<8x8xf32>
    %80 = vector.extract_strided_slice %37 {offsets = [0, 24], sizes = [8, 8], strides = [1, 1]} : vector<16x96xf32> to vector<8x8xf32>
    %81 = vector.extract_strided_slice %37 {offsets = [0, 56], sizes = [8, 8], strides = [1, 1]} : vector<16x96xf32> to vector<8x8xf32>
    %82 = vector.extract_strided_slice %37 {offsets = [0, 88], sizes = [8, 8], strides = [1, 1]} : vector<16x96xf32> to vector<8x8xf32>
    %cst_32 = arith.constant dense<0.000000e+00> : vector<8x8xf32>
    %83 = tpu.matmul %80, %81, %cst_32 {dimension_numbers = #tpu.dot_dimension_numbers<[1], [1], [0], [0], [0, 0, 1, 0], [], []>} : vector<8x8xf32>, vector<8x8xf32>, vector<8x8xf32> -> vector<8x8xf32>
    %cst_33 = arith.constant dense<0xFF800000> : vector<8xf32>
    %84 = vector.multi_reduction <maximumf>, %83, %cst_33 [1] : vector<8x8xf32> to vector<8xf32>
    %85 = vector.shape_cast %84 : vector<8xf32> to vector<8x1xf32>
    %86 = vector.broadcast %85 : vector<8x1xf32> to vector<8x8xf32>
    %87 = arith.subf %83, %86 : vector<8x8xf32>
    %88 = math.exp %87 : vector<8x8xf32>
    %cst_34 = arith.constant dense<0.000000e+00> : vector<8xf32>
    %89 = vector.multi_reduction <add>, %88, %cst_34 [1] : vector<8x8xf32> to vector<8xf32>
    %90 = vector.shape_cast %89 : vector<8xf32> to vector<8x1xf32>
    %91 = vector.broadcast %90 : vector<8x1xf32> to vector<8x8xf32>
    %92 = arith.divf %88, %91 : vector<8x8xf32>
    %cst_35 = arith.constant dense<0.000000e+00> : vector<8x8xf32>
    %93 = tpu.matmul %92, %82, %cst_35 {dimension_numbers = #tpu.dot_dimension_numbers<[1], [0], [0], [1], [0, 0, 1, 1], [], []>} : vector<8x8xf32>, vector<8x8xf32>, vector<8x8xf32> -> vector<8x8xf32>
    %94 = tpu.concatenate %51, %65, %79, %93 in 1 : vector<8x8xf32>, vector<8x8xf32>, vector<8x8xf32>, vector<8x8xf32> -> vector<8x32xf32>
    %95 = vector.extract_strided_slice %37 {offsets = [8, 0], sizes = [8, 8], strides = [1, 1]} : vector<16x96xf32> to vector<8x8xf32>
    %96 = vector.extract_strided_slice %37 {offsets = [8, 32], sizes = [8, 8], strides = [1, 1]} : vector<16x96xf32> to vector<8x8xf32>
    %97 = vector.extract_strided_slice %37 {offsets = [8, 64], sizes = [8, 8], strides = [1, 1]} : vector<16x96xf32> to vector<8x8xf32>
    %cst_36 = arith.constant dense<0.000000e+00> : vector<8x8xf32>
    %98 = tpu.matmul %95, %96, %cst_36 {dimension_numbers = #tpu.dot_dimension_numbers<[1], [1], [0], [0], [0, 0, 1, 0], [], []>} : vector<8x8xf32>, vector<8x8xf32>, vector<8x8xf32> -> vector<8x8xf32>
    %cst_37 = arith.constant dense<0xFF800000> : vector<8xf32>
    %99 = vector.multi_reduction <maximumf>, %98, %cst_37 [1] : vector<8x8xf32> to vector<8xf32>
    %100 = vector.shape_cast %99 : vector<8xf32> to vector<8x1xf32>
    %101 = vector.broadcast %100 : vector<8x1xf32> to vector<8x8xf32>
    %102 = arith.subf %98, %101 : vector<8x8xf32>
    %103 = math.exp %102 : vector<8x8xf32>
    %cst_38 = arith.constant dense<0.000000e+00> : vector<8xf32>
    %104 = vector.multi_reduction <add>, %103, %cst_38 [1] : vector<8x8xf32> to vector<8xf32>
    %105 = vector.shape_cast %104 : vector<8xf32> to vector<8x1xf32>
    %106 = vector.broadcast %105 : vector<8x1xf32> to vector<8x8xf32>
    %107 = arith.divf %103, %106 : vector<8x8xf32>
    %cst_39 = arith.constant dense<0.000000e+00> : vector<8x8xf32>
    %108 = tpu.matmul %107, %97, %cst_39 {dimension_numbers = #tpu.dot_dimension_numbers<[1], [0], [0], [1], [0, 0, 1, 1], [], []>} : vector<8x8xf32>, vector<8x8xf32>, vector<8x8xf32> -> vector<8x8xf32>
    %109 = vector.extract_strided_slice %37 {offsets = [8, 8], sizes = [8, 8], strides = [1, 1]} : vector<16x96xf32> to vector<8x8xf32>
    %110 = vector.extract_strided_slice %37 {offsets = [8, 40], sizes = [8, 8], strides = [1, 1]} : vector<16x96xf32> to vector<8x8xf32>
    %111 = vector.extract_strided_slice %37 {offsets = [8, 72], sizes = [8, 8], strides = [1, 1]} : vector<16x96xf32> to vector<8x8xf32>
    %cst_40 = arith.constant dense<0.000000e+00> : vector<8x8xf32>
    %112 = tpu.matmul %109, %110, %cst_40 {dimension_numbers = #tpu.dot_dimension_numbers<[1], [1], [0], [0], [0, 0, 1, 0], [], []>} : vector<8x8xf32>, vector<8x8xf32>, vector<8x8xf32> -> vector<8x8xf32>
    %cst_41 = arith.constant dense<0xFF800000> : vector<8xf32>
    %113 = vector.multi_reduction <maximumf>, %112, %cst_41 [1] : vector<8x8xf32> to vector<8xf32>
    %114 = vector.shape_cast %113 : vector<8xf32> to vector<8x1xf32>
    %115 = vector.broadcast %114 : vector<8x1xf32> to vector<8x8xf32>
    %116 = arith.subf %112, %115 : vector<8x8xf32>
    %117 = math.exp %116 : vector<8x8xf32>
    %cst_42 = arith.constant dense<0.000000e+00> : vector<8xf32>
    %118 = vector.multi_reduction <add>, %117, %cst_42 [1] : vector<8x8xf32> to vector<8xf32>
    %119 = vector.shape_cast %118 : vector<8xf32> to vector<8x1xf32>
    %120 = vector.broadcast %119 : vector<8x1xf32> to vector<8x8xf32>
    %121 = arith.divf %117, %120 : vector<8x8xf32>
    %cst_43 = arith.constant dense<0.000000e+00> : vector<8x8xf32>
    %122 = tpu.matmul %121, %111, %cst_43 {dimension_numbers = #tpu.dot_dimension_numbers<[1], [0], [0], [1], [0, 0, 1, 1], [], []>} : vector<8x8xf32>, vector<8x8xf32>, vector<8x8xf32> -> vector<8x8xf32>
    %123 = vector.extract_strided_slice %37 {offsets = [8, 16], sizes = [8, 8], strides = [1, 1]} : vector<16x96xf32> to vector<8x8xf32>
    %124 = vector.extract_strided_slice %37 {offsets = [8, 48], sizes = [8, 8], strides = [1, 1]} : vector<16x96xf32> to vector<8x8xf32>
    %125 = vector.extract_strided_slice %37 {offsets = [8, 80], sizes = [8, 8], strides = [1, 1]} : vector<16x96xf32> to vector<8x8xf32>
    %cst_44 = arith.constant dense<0.000000e+00> : vector<8x8xf32>
    %126 = tpu.matmul %123, %124, %cst_44 {dimension_numbers = #tpu.dot_dimension_numbers<[1], [1], [0], [0], [0, 0, 1, 0], [], []>} : vector<8x8xf32>, vector<8x8xf32>, vector<8x8xf32> -> vector<8x8xf32>
    %cst_45 = arith.constant dense<0xFF800000> : vector<8xf32>
    %127 = vector.multi_reduction <maximumf>, %126, %cst_45 [1] : vector<8x8xf32> to vector<8xf32>
    %128 = vector.shape_cast %127 : vector<8xf32> to vector<8x1xf32>
    %129 = vector.broadcast %128 : vector<8x1xf32> to vector<8x8xf32>
    %130 = arith.subf %126, %129 : vector<8x8xf32>
    %131 = math.exp %130 : vector<8x8xf32>
    %cst_46 = arith.constant dense<0.000000e+00> : vector<8xf32>
    %132 = vector.multi_reduction <add>, %131, %cst_46 [1] : vector<8x8xf32> to vector<8xf32>
    %133 = vector.shape_cast %132 : vector<8xf32> to vector<8x1xf32>
    %134 = vector.broadcast %133 : vector<8x1xf32> to vector<8x8xf32>
    %135 = arith.divf %131, %134 : vector<8x8xf32>
    %cst_47 = arith.constant dense<0.000000e+00> : vector<8x8xf32>
    %136 = tpu.matmul %135, %125, %cst_47 {dimension_numbers = #tpu.dot_dimension_numbers<[1], [0], [0], [1], [0, 0, 1, 1], [], []>} : vector<8x8xf32>, vector<8x8xf32>, vector<8x8xf32> -> vector<8x8xf32>
    %137 = vector.extract_strided_slice %37 {offsets = [8, 24], sizes = [8, 8], strides = [1, 1]} : vector<16x96xf32> to vector<8x8xf32>
    %138 = vector.extract_strided_slice %37 {offsets = [8, 56], sizes = [8, 8], strides = [1, 1]} : vector<16x96xf32> to vector<8x8xf32>
    %139 = vector.extract_strided_slice %37 {offsets = [8, 88], sizes = [8, 8], strides = [1, 1]} : vector<16x96xf32> to vector<8x8xf32>
    %cst_48 = arith.constant dense<0.000000e+00> : vector<8x8xf32>
    %140 = tpu.matmul %137, %138, %cst_48 {dimension_numbers = #tpu.dot_dimension_numbers<[1], [1], [0], [0], [0, 0, 1, 0], [], []>} : vector<8x8xf32>, vector<8x8xf32>, vector<8x8xf32> -> vector<8x8xf32>
    %cst_49 = arith.constant dense<0xFF800000> : vector<8xf32>
    %141 = vector.multi_reduction <maximumf>, %140, %cst_49 [1] : vector<8x8xf32> to vector<8xf32>
    %142 = vector.shape_cast %141 : vector<8xf32> to vector<8x1xf32>
    %143 = vector.broadcast %142 : vector<8x1xf32> to vector<8x8xf32>
    %144 = arith.subf %140, %143 : vector<8x8xf32>
    %145 = math.exp %144 : vector<8x8xf32>
    %cst_50 = arith.constant dense<0.000000e+00> : vector<8xf32>
    %146 = vector.multi_reduction <add>, %145, %cst_50 [1] : vector<8x8xf32> to vector<8xf32>
    %147 = vector.shape_cast %146 : vector<8xf32> to vector<8x1xf32>
    %148 = vector.broadcast %147 : vector<8x1xf32> to vector<8x8xf32>
    %149 = arith.divf %145, %148 : vector<8x8xf32>
    %cst_51 = arith.constant dense<0.000000e+00> : vector<8x8xf32>
    %150 = tpu.matmul %149, %139, %cst_51 {dimension_numbers = #tpu.dot_dimension_numbers<[1], [0], [0], [1], [0, 0, 1, 1], [], []>} : vector<8x8xf32>, vector<8x8xf32>, vector<8x8xf32> -> vector<8x8xf32>
    %151 = tpu.concatenate %108, %122, %136, %150 in 1 : vector<8x8xf32>, vector<8x8xf32>, vector<8x8xf32>, vector<8x8xf32> -> vector<8x32xf32>
    %152 = tpu.concatenate %94, %151 in 0 : vector<8x32xf32>, vector<8x32xf32> -> vector<16x32xf32>
    %cst_52 = arith.constant dense<0.000000e+00> : vector<16x32xf32>
    %153 = tpu.matmul %152, %10, %cst_52 {dimension_numbers = #tpu.dot_dimension_numbers<[1], [0], [0], [1], [0, 0, 1, 1], [], []>} : vector<16x32xf32>, vector<32x32xf32>, vector<16x32xf32> -> vector<16x32xf32>
    %154 = vector.broadcast %6 : vector<1x32xf32> to vector<16x32xf32>
    %155 = arith.addf %153, %154 : vector<16x32xf32>
    %156 = arith.addf %0, %155 : vector<16x32xf32>
    %cst_53 = arith.constant dense<0.000000e+00> : vector<16xf32>
    %157 = vector.multi_reduction <add>, %156, %cst_53 [1] : vector<16x32xf32> to vector<16xf32>
    %158 = vector.shape_cast %157 : vector<16xf32> to vector<16x1xf32>
    %cst_54 = arith.constant 3.200000e+01 : f32
    %159 = vector.broadcast %cst_54 : f32 to vector<16x1xf32>
    %160 = arith.divf %158, %159 : vector<16x1xf32>
    %161 = vector.broadcast %160 : vector<16x1xf32> to vector<16x32xf32>
    %162 = arith.subf %156, %161 : vector<16x32xf32>
    %163 = arith.mulf %162, %162 : vector<16x32xf32>
    %cst_55 = arith.constant dense<0.000000e+00> : vector<16xf32>
    %164 = vector.multi_reduction <add>, %163, %cst_55 [1] : vector<16x32xf32> to vector<16xf32>
    %165 = vector.shape_cast %164 : vector<16xf32> to vector<16x1xf32>
    %cst_56 = arith.constant 0.0322580636 : f32
    %166 = vector.broadcast %cst_56 : f32 to vector<16x1xf32>
    %167 = arith.mulf %165, %166 : vector<16x1xf32>
    %168 = math.sqrt %167 : vector<16x1xf32>
    %169 = vector.broadcast %160 : vector<16x1xf32> to vector<16x32xf32>
    %170 = arith.subf %156, %169 : vector<16x32xf32>
    %171 = vector.broadcast %3 : vector<1x32xf32> to vector<16x32xf32>
    %172 = arith.mulf %171, %170 : vector<16x32xf32>
    %cst_57 = arith.constant 9.99999997E-7 : f32
    %173 = vector.broadcast %cst_57 : f32 to vector<16x1xf32>
    %174 = arith.addf %168, %173 : vector<16x1xf32>
    %175 = vector.broadcast %174 : vector<16x1xf32> to vector<16x32xf32>
    %176 = arith.divf %172, %175 : vector<16x32xf32>
    %177 = vector.broadcast %4 : vector<1x32xf32> to vector<16x32xf32>
    %178 = arith.addf %176, %177 : vector<16x32xf32>
    %cst_58 = arith.constant dense<0.000000e+00> : vector<16x64xf32>
    %179 = tpu.matmul %178, %11, %cst_58 {dimension_numbers = #tpu.dot_dimension_numbers<[1], [0], [0], [1], [0, 0, 1, 1], [], []>} : vector<16x32xf32>, vector<32x64xf32>, vector<16x64xf32> -> vector<16x64xf32>
    %180 = vector.broadcast %7 : vector<1x64xf32> to vector<16x64xf32>
    %181 = arith.addf %179, %180 : vector<16x64xf32>
    %cst_59 = arith.constant 0.000000e+00 : f32
    %182 = vector.broadcast %cst_59 : f32 to vector<16x64xf32>
    %183 = arith.maximumf %181, %182 : vector<16x64xf32>
    %cst_60 = arith.constant dense<0.000000e+00> : vector<16x32xf32>
    %184 = tpu.matmul %183, %12, %cst_60 {dimension_numbers = #tpu.dot_dimension_numbers<[1], [0], [0], [1], [0, 0, 1, 1], [], []>} : vector<16x64xf32>, vector<64x32xf32>, vector<16x32xf32> -> vector<16x32xf32>
    %185 = vector.broadcast %8 : vector<1x32xf32> to vector<16x32xf32>
    %186 = arith.addf %184, %185 : vector<16x32xf32>
    %187 = arith.addf %156, %186 : vector<16x32xf32>
    %c0_61 = arith.constant 0 : index
    %c0_62 = arith.constant 0 : index
    %188 = vector.load %arg4[%c0_61, %c0_62] : memref<16x32xf32, #tpu.memory_space<vmem>>, vector<16x32xf32>
    tpu.vector_store %arg4[%c0_61, %c0_62], %187 {strides = array<i32>} : memref<16x32xf32, #tpu.memory_space<vmem>>, vector<16x32xf32>,
    return
  }
  func.func @transform_0(%arg0: i32) -> (i32, i32) {
    %c0_i32 = arith.constant 0 : i32
    %c0_i32_0 = arith.constant 0 : i32
    return %arg0, %c0_i32 : i32, i32
  }
  func.func @transform_1(%arg0: i32) -> (i32, i32) {
    %c0_i32 = arith.constant 0 : i32
    %c0_i32_0 = arith.constant 0 : i32
    %c0_i32_1 = arith.constant 0 : i32
    return %c0_i32, %c0_i32_0 : i32, i32
  }
  func.func @transform_2(%arg0: i32) -> (i32, i32) {
    %c0_i32 = arith.constant 0 : i32
    %c0_i32_0 = arith.constant 0 : i32
    %c0_i32_1 = arith.constant 0 : i32
    return %c0_i32, %c0_i32_0 : i32, i32
  }
  func.func @transform_3(%arg0: i32) -> (i32, i32) {
    %c0_i32 = arith.constant 0 : i32
    %c0_i32_0 = arith.constant 0 : i32
    return %arg0, %c0_i32 : i32, i32
  }
}

</mosaic_0001>

<bundles_post_ra>
// kernel: _encoder_layer_call.1
= control target key start
LH: loop header
LB: loop body
LE: loop exit
PB: predicated region body
PF: predicated region fallthrough
CT: control target
= control target key end

     0   :  { %8 = vsyncpa [#allocation3], 0  ;;  %s2628_s0 = inlined_call_operand.hbm [shape: f32[16,32], index: 0, kind: input, shape index: {}]   ;;  %s2629_s1 = inlined_call_operand.hbm [shape: f32[8,96], index: 1, kind: input, shape index: {}]   ;;  %s2630_s2 = inlined_call_operand.hbm [shape: f32[160,96], index: 2, kind: input, shape index: {}]   ;;  %s2631_s3 = inlined_call_operand.hbm [shape: f32[16,32], index: 3, kind: output, shape index: {}]  }
   0x1   :  { %9 = vsyncpa [#allocation6], 0 }
   0x2   :  { %10 = vsyncpa [#allocation4], 0  ;;  %s2343_s12 = smov [#allocation5]   ;;  %s2344_s14 = smov [#allocation2]  }
   0x3   :  { %s29_s13 = sshll.u32 %s2343_s12, 4  ;;  %s16_s15 = sshll.u32 %s2344_s14, 4  ;;  %s30_s13 = int_to_ptr.vmem [resolvable:$true] %s29_s13  ;;  %s2384_s15 = int_to_ptr.vmem [resolvable:$true] %s16_s15 }
   0x4   :  { %s2249_s18 = scalar_lea.hbm %s2629_s1, 128 }
   0x5   :  { %p2250_p0 = scmp.ne.s32.totalorder %s2629_s1, %s2249_s18  ;;  %p2253_p1 = scmp.lt.u32.totalorder %s2249_s18, %s2629_s1 }
   0x7   :  { %p2255_p2 = pnand %p2253_p1, %p2250_p0 }
   0x9   :  { %2258 = shalt.err (!%p2255_p2)
}
   0xa   :  { %s2259_s23 = scalar_lea.vmem %s30_s13, 128  ;;  %p2264_p4 = scmp.lt.s32.totalorder %s30_s13, %s30_s13 }
   0xb   :  { %p2260_p3 = scmp.ne.s32.totalorder %s30_s13, %s2259_s23  ;;  %p2265_p5 = scmp.lt.s32.totalorder %s2259_s23, %s2259_s23 }
   0xd   :  { %p2266_p6 = por %p2265_p5, %p2264_p4 }
   0xf   :  { %p2267_p7 = pnand %p2266_p6, %p2260_p3 }
  0x11   :  { %2270 = shalt.err (!%p2267_p7)
}
  0x12   :  { %32 = dma.hbm_to_vmem [thread:$0]  %s2629_s1, 128, %s30_s13, [#allocation6]  }
  0x13   :  { %s2271_s28 = scalar_lea.hbm %s2628_s0, 256 }
  0x14   :  { %p2272_p8 = scmp.ne.s32.totalorder %s2628_s0, %s2271_s28  ;;  %p2275_p9 = scmp.lt.u32.totalorder %s2271_s28, %s2628_s0 }
  0x16   :  { %p2277_p10 = pnand %p2275_p9, %p2272_p8 }
  0x18   :  { %2280 = shalt.err (!%p2277_p10)
}
  0x19   :  { %s2281_s6 = scalar_lea.vmem %s2384_s15, 256  ;;  %p2286_p12 = scmp.lt.s32.totalorder %s2384_s15, %s2384_s15 }
  0x1a   :  { %p2282_p11 = scmp.ne.s32.totalorder %s2384_s15, %s2281_s6  ;;  %p2287_p13 = scmp.lt.s32.totalorder %s2281_s6, %s2281_s6 }
  0x1c   :  { %p2288_p0 = por %p2287_p13, %p2286_p12 }
  0x1e   :  { %p2289_p1 = pnand %p2288_p0, %p2282_p11 }
  0x20   :  { %2292 = shalt.err (!%p2289_p1)
}
  0x21   :  { %s2345_s1 = smov 128   ;;  %s2346_s7 = smov 8  }
  0x22   :  { %22 = dma.hbm_to_vmem [thread:$0]  %s2628_s0, 256, %s2384_s15, [#allocation3], %s2345_s1, %s2345_s1, %s2346_s7  }
  0x23   :  { %s2347_s10 = smov [#allocation7]   ;;  %s2293_s14 = scalar_lea.hbm %s2630_s2, 2560 }
  0x24   :  { %s38_s11 = sshll.u32 %s2347_s10, 4  ;;  %p2294_p2 = scmp.ne.s32.totalorder %s2630_s2, %s2293_s14  ;;  %s39_s11 = int_to_ptr.vmem [resolvable:$true] %s38_s11 }
  0x25   :  { %p2297_p3 = scmp.lt.u32.totalorder %s2293_s14, %s2630_s2 }
  0x27   :  { %p2299_p4 = pnand %p2297_p3, %p2294_p2 }
  0x29   :  { %2302 = shalt.err (!%p2299_p4)
}
  0x2a   :  { %s2303_s20 = scalar_lea.vmem %s39_s11, 2560  ;;  %p2308_p6 = scmp.lt.s32.totalorder %s39_s11, %s39_s11 }
  0x2b   :  { %p2304_p5 = scmp.ne.s32.totalorder %s39_s11, %s2303_s20  ;;  %p2309_p7 = scmp.lt.s32.totalorder %s2303_s20, %s2303_s20 }
  0x2d   :  { %p2310_p8 = por %p2309_p7, %p2308_p6 }
  0x2f   :  { %p2311_p9 = pnand %p2310_p8, %p2304_p5 }
  0x31   :  { %2314 = shalt.err (!%p2311_p9)
}
  0x32   :  { %44 = dma.hbm_to_vmem [thread:$0]  %s2630_s2, 2560, %s39_s11, [#allocation6], %s2345_s1, %s2345_s1, %s2346_s7  }
  0x33   :  { %2337 = dma.done.wait [#allocation3], 256  }
  0x34   :  { %2338 = vsyncadd [#allocation3], 4294967040 }
  0x35   :  { %2339 = dma.done.wait [#allocation6], 2688  }
  0x36   :  { %2340 = vsyncadd [#allocation6], 4294964608  ;;  %vm84_vm0 = vcmask 261120   ;;  %v2433_v0 = vld [vmem:[#allocation2] sm:$0xff]  ;;  %v2435_v1 = vld [vmem:[#allocation2 + $0x8] sm:$0xff]  ;;  %v2348_v46 = vmov 0.0  }
  0x37   :  { %v85_v2 = vsel %vm84_vm0, %v2433_v0, 0.0  ;;  %v88_v3 = vsel %vm84_vm0, %v2435_v1, 0.0  ;;  %v64_v14 = vld [vmem:[#allocation7] sm:$0xff]  ;;  %v65_v15 = vld [vmem:[#allocation7 + $0x8] sm:$0xff]  ;;  %v66_v16 = vld [vmem:[#allocation7 + $0x10] sm:$0xff]  ;;  %2029 = vmatprep.subr.mxu0 %v2348_v46  ;;  %vm2349_vm5 = vmmov 0  }
  0x38   :  { %86 = vadd.xlane.f32.xlu0 %v85_v2  ;;  %v2140_v17 = vpack.c.bf16 %v65_v15, %v64_v14  ;;  %v67_v18 = vld [vmem:[#allocation7 + $0x18] sm:$0xff]  ;;  %2031 = vmatprep.mubr.msk.f32.mxu0 %vm2349_vm5, %v2348_v46  ;;  %s2350_s2 = smov 88   ;;  %s2351_s21 = smov 96   ;;  %vm226_vm6 = vcmask 64512   ;;  %vm896_vm7 = vcmask 130048   ;;  %vm898_vm8 = vcmask 195584  }
  0x39   :  { %v2144_v19 = vpack.c.bf16 %v67_v18, %v66_v16  ;;  %v1908_v36 = vld [vmem:[#allocation5] ss:$0 sm:$0xff]  ;;  %v1909_v39 = vld [vmem:[#allocation5 + $0x1] ss:$0 sm:$0xff]  ;;  %v1910_v47 = vld [vmem:[#allocation5 + $0x4] ss:$0 sm:$0xff] }
  0x3a   :  { %2141 = vmatprep.subr.bf16.mxu1 %v2140_v17  ;;  %s2352_s22 = smov 120   ;;  %s2353_s23 = smov 112   ;;  %vm1804_vm13 = vcmask 523264  }
  0x3b   :  { %2143 = vmatpush3.bf16.msra.mxu1 %v2140_v17  ;;  %s2354_s24 = smov 80   ;;  %s2355_s25 = smov 104  }
  0x3c   :  { %89 = vadd.xlane.f32.xlu0 %v88_v3  ;;  %2145 = vmatprep.subr.bf16.mxu1 %v2144_v19  ;;  %s2356_s26 = smov 72   ;;  %s2357_s27 = smov 64  }
  0x3d   :  { %s2358_s28 = smov 48   ;;  %s2359_s29 = smov 40  }
  0x3e   :  { %s2360_s30 = smov 56   ;;  %s2361_s4 = smov 16  }
  0x3f   :  { %2147 = vmatpush3.bf16.msra.mxu1 %v2144_v19  ;;  %s2362_s5 = smov 24   ;;  %s2363_s6 = smov [#allocation8]  }
  0x40   :  { %2019 = vmatprep.subr.mxu1 %v2348_v46  ;;  %s1895_s8 = sshll.u32 %s2363_s6, 4  ;;  %s1896_s8 = int_to_ptr.vmem [resolvable:$true] %s1895_s8 }
  0x41   :  { %s2315_s9 = scalar_lea.vmem %s1896_s8, 256  ;;  %p2320_p11 = scmp.lt.s32.totalorder %s1896_s8, %s1896_s8 }
  0x42   :  { %p2316_p10 = scmp.ne.s32.totalorder %s1896_s8, %s2315_s9  ;;  %p2321_p12 = scmp.lt.s32.totalorder %s2315_s9, %s2315_s9 }
  0x44   :  { %p2322_p13 = por %p2321_p12, %p2320_p11 }
  0x46   :  { %p2323_p0 = pnand %p2322_p13, %p2316_p10 }
  0xc5   :  { %v87_v4 = vpop.xlane.xlu0 %86 }
  0xc6   :  { %v92_v5 = vmul.f32 0.03125, %v87_v4 }
  0xc8   :  { %v94_v6 = vsub.f32 %v2433_v0, %v92_v5 }
  0xc9   :  { %v90_v7 = vpop.xlane.xlu0 %89 }
  0xca   :  { %v93_v8 = vmul.f32 0.03125, %v90_v7  ;;  %v96_v9 = vmul.f32 %v94_v6, %v94_v6  ;;  %v124_v37 = vmul.f32 %v1908_v36, %v94_v6 }
  0xcc   :  { %v95_v10 = vsub.f32 %v2435_v1, %v93_v8  ;;  %v98_v11 = vsel %vm84_vm0, %v96_v9, 0.0 }
  0xcd   :  { %99 = vadd.xlane.f32.xlu1 %v98_v11 }
  0xce   :  { %v97_v12 = vmul.f32 %v95_v10, %v95_v10  ;;  %v125_v41 = vmul.f32 %v1908_v36, %v95_v10 }
  0xd0   :  { %v101_v13 = vsel %vm84_vm0, %v97_v12, 0.0 }
  0xd1   :  { %102 = vadd.xlane.f32.xlu1 %v101_v13 }
 0x15a   :  { %v100_v20 = vpop.xlane.xlu1 %99 }
 0x15b   :  { %v104_v21 = vmul.f32 0.032258064, %v100_v20 }
 0x15d   :  { %2201 = vrsqrt.f32 %v104_v21  ;;  %vm108_vm1 = vcmp.eq.f32.partialorder %v104_v21, inf  ;;  %v111_v26 = vand.u32 2147483648, %v104_v21  ;;  %vm110_vm2 = vcmp.eq.f32.partialorder %v104_v21, 0.0 }
 0x15e   :  { %v103_v22 = vpop.xlane.xlu1 %102 }
 0x15f   :  { %v105_v23 = vmul.f32 0.032258064, %v103_v22 }
 0x161   :  { %2203 = vrsqrt.f32 %v105_v23  ;;  %vm115_vm3 = vcmp.eq.f32.partialorder %v105_v23, inf  ;;  %v118_v32 = vand.u32 2147483648, %v105_v23  ;;  %vm117_vm4 = vcmp.eq.f32.partialorder %v105_v23, 0.0 }
 0x167   :  { %v2202_v24 = vpop.eup %2201 }
 0x168   :  { %v107_v25 = vmul.f32 %v2202_v24, %v104_v21 }
 0x16a   :  { %v109_v27 = vsel %vm108_vm1, %v104_v21, %v107_v25 }
 0x16b   :  { %v2204_v28 = vpop.eup %2203  ;;  %v112_v29 = vsel %vm110_vm2, %v111_v26, %v109_v27 }
 0x16c   :  { %v114_v30 = vmul.f32 %v2204_v28, %v105_v23  ;;  %v126_v31 = vadd.f32 1e-06, %v112_v29 }
 0x16e   :  { %v116_v33 = vsel %vm115_vm3, %v105_v23, %v114_v30  ;;  %2205 = vrcp.f32 %v126_v31 }
 0x16f   :  { %v119_v34 = vsel %vm117_vm4, %v118_v32, %v116_v33 }
 0x170   :  { %v127_v35 = vadd.f32 1e-06, %v119_v34 }
 0x172   :  { %2207 = vrcp.f32 %v127_v35 }
 0x178   :  { %v2206_v38 = vpop.eup %2205 }
 0x179   :  { %v129_v40 = vmul.f32 %v2206_v38, %v124_v37 }
 0x17b   :  { %v136_v42 = vadd.f32 %v1909_v39, %v129_v40 }
 0x17c   :  { %v2208_v43 = vpop.eup %2207 }
 0x17d   :  { %v131_v44 = vmul.f32 %v2208_v43, %v125_v41  ;;  %2016 = vmatprep.mubr.msk.f32.mxu1 %vm84_vm0, %v136_v42 }
 0x17f   :  { %v137_v45 = vadd.f32 %v1909_v39, %v131_v44 }
 0x181   :  { %2017 = vmatmul.mubr.msk.f32.vlgmr.msra.gmra.mrb[0].mxu1 %vm84_vm0, %v137_v45 }
 0x182   :  { %2021 = vmatprep.mubr.msk.f32.mxu1 %vm2349_vm5, %v2348_v46 }
 0x254   :  { %v2018_v48 = vpop.f32.mrb[0].mxu1 }
 0x255   :  { %v214_v49 = vpop.f32.mrb[1].mxu1  ;;  %v2461_v51 = vadd.f32 %v2018_v48, %v1910_v47 }
 0x256   :  { %v2453_v50 = vadd.f32 %v1910_v47, %v214_v49 }
 0x258   :  { %390 = vrot.lane.b32.xlu1 %v2453_v50, %s2350_s2  ;;  %224 = vrot.lane.b32.xlu0 %v2453_v50, %s2351_s21 }
 0x25c   :  { %388 = vrot.lane.b32.xlu1 %v2453_v50, %s2352_s22  ;;  %553 = vrot.lane.b32.xlu0 %v2453_v50, %s2353_s23 }
 0x260   :  { %555 = vrot.lane.b32.xlu1 %v2453_v50, %s2354_s24  ;;  %718 = vrot.lane.b32.xlu0 %v2453_v50, %s2355_s25 }
 0x264   :  { %720 = vrot.lane.b32.xlu1 %v2453_v50, %s2356_s26  ;;  %1066 = vrot.lane.b32.xlu0 %v2461_v51, %s2350_s2 }
 0x268   :  { %901 = vrot.lane.b32.xlu1 %v2461_v51, %s2351_s21  ;;  %1231 = vrot.lane.b32.xlu0 %v2461_v51, %s2354_s24 }
 0x26c   :  { %1064 = vrot.lane.b32.xlu1 %v2461_v51, %s2352_s22  ;;  %1396 = vrot.lane.b32.xlu0 %v2461_v51, %s2356_s26 }
 0x270   :  { %1229 = vrot.lane.b32.xlu1 %v2461_v51, %s2353_s23 }
 0x274   :  { %1394 = vrot.lane.b32.xlu1 %v2461_v51, %s2355_s25 }
 0x2ca   :  { %v391_v52 = vpop.permute.xlu1 %390  ;;  %v225_v53 = vpop.permute.xlu0 %224 }
 0x2cb   :  { %2020 = vmatpush3.xpose.msk.msra.mxu1 %vm226_vm6, %v225_v53  ;;  %2030 = vmatpush3.xpose.msk.msra.mxu0 %vm226_vm6, %v391_v52 }
 0x2cc   :  { %2039 = vmatprep.subr.mxu0 %v2348_v46  ;;  %2024 = vmatprep.subr.mxu1 %v2348_v46 }
 0x2ce   :  { %v389_v54 = vpop.permute.xlu1 %388  ;;  %2022 = vmatmul.mubr.msk.f32.vlgmr.msra.gmra.mrb[2].mxu1 %vm226_vm6, %v2453_v50  ;;  %v554_v55 = vpop.permute.xlu0 %553 }
 0x2cf   :  { %2032 = vmatmul.mubr.msk.f32.vlgmr.msra.gmra.mrb[0].mxu0 %vm226_vm6, %v389_v54  ;;  %2026 = vmatprep.mubr.msk.f32.mxu1 %vm2349_vm5, %v2348_v46 }
 0x2d0   :  { %2041 = vmatprep.mubr.msk.f32.mxu0 %vm2349_vm5, %v2348_v46 }
 0x2d2   :  { %v556_v56 = vpop.permute.xlu1 %555  ;;  %v719_v57 = vpop.permute.xlu0 %718 }
 0x2d3   :  { %2040 = vmatpush3.xpose.msk.msra.mxu0 %vm226_vm6, %v556_v56 }
 0x2d4   :  { %2049 = vmatprep.subr.mxu0 %v2348_v46 }
 0x2d6   :  { %v721_v58 = vpop.permute.xlu1 %720  ;;  %2042 = vmatmul.mubr.msk.f32.vlgmr.msra.gmra.mrb[2].mxu0 %vm226_vm6, %v554_v55  ;;  %v1067_v59 = vpop.permute.xlu0 %1066 }
 0x2d7   :  { %2050 = vmatpush3.xpose.msk.msra.mxu0 %vm226_vm6, %v721_v58  ;;  %2051 = vmatprep.mubr.msk.f32.mxu0 %vm2349_vm5, %v2348_v46 }
 0x2d8   :  { %2059 = vmatprep.subr.mxu0 %v2348_v46 }
 0x2da   :  { %v902_v60 = vpop.permute.xlu1 %901  ;;  %2052 = vmatmul.mubr.msk.f32.vlgmr.msra.gmra.mrb[4].mxu0 %vm226_vm6, %v719_v57  ;;  %v1232_v62 = vpop.permute.xlu0 %1231 }
 0x2db   :  { %2060 = vmatpush3.xpose.msk.msra.mxu0 %vm226_vm6, %v902_v60  ;;  %2061 = vmatprep.mubr.msk.f32.mxu0 %vm2349_vm5, %v2348_v46 }
 0x2dc   :  { %2069 = vmatprep.subr.mxu0 %v2348_v46 }
 0x2de   :  { %v1065_v61 = vpop.permute.xlu1 %1064  ;;  %2062 = vmatmul.mubr.msk.f32.vlgmr.msra.gmra.mrb[6].mxu0 %vm226_vm6, %v2461_v51  ;;  %v1397_v2 = vpop.permute.xlu0 %1396 }
 0x2df   :  { %2070 = vmatpush3.xpose.msk.msra.mxu0 %vm226_vm6, %v1067_v59  ;;  %2071 = vmatprep.mubr.msk.f32.mxu0 %vm2349_vm5, %v2348_v46 }
 0x2e0   :  { %2079 = vmatprep.subr.mxu0 %v2348_v46 }
 0x2e2   :  { %2072 = vmatmul.mubr.msk.f32.vlgmr.msra.gmra.mrb[8].mxu0 %vm226_vm6, %v1065_v61  ;;  %v1230_v63 = vpop.permute.xlu1 %1229 }
 0x2e3   :  { %2080 = vmatpush3.xpose.msk.msra.mxu0 %vm226_vm6, %v1232_v62  ;;  %2081 = vmatprep.mubr.msk.f32.mxu0 %vm2349_vm5, %v2348_v46 }
 0x2e4   :  { %2089 = vmatprep.subr.mxu0 %v2348_v46 }
 0x2e6   :  { %2082 = vmatmul.mubr.msk.f32.vlgmr.msra.gmra.mrb[10].mxu0 %vm226_vm6, %v1230_v63  ;;  %v1395_v3 = vpop.permute.xlu1 %1394 }
 0x2e7   :  { %2090 = vmatpush3.xpose.msk.msra.mxu0 %vm226_vm6, %v1397_v2  ;;  %2091 = vmatprep.mubr.msk.f32.mxu0 %vm2349_vm5, %v2348_v46 }
 0x2ea   :  { %2092 = vmatmul.mubr.msk.f32.vlgmr.msra.gmra.mrb[12].mxu0 %vm226_vm6, %v1395_v3 }
 0x3a1   :  { %v297_v4 = vpop.f32.mrb[2].mxu1 }
 0x3a2   :  { %v2023_v5 = vpop.f32.mrb[3].mxu1  ;;  %v462_v6 = vpop.f32.mrb[0].mxu0  ;;  %v301_v7 = vsel %vm226_vm6, %v297_v4, -inf }
 0x3a3   :  { %v2033_v8 = vpop.f32.mrb[1].mxu0  ;;  %302 = vmax.xlane.f32.xlu0 %v301_v7  ;;  %v466_v9 = vsel %vm226_vm6, %v462_v6, -inf }
 0x3a4   :  { %467 = vmax.xlane.f32.xlu1 %v466_v9 }
 0x3a9   :  { %v627_v10 = vpop.f32.mrb[2].mxu0 }
 0x3aa   :  { %v2043_v11 = vpop.f32.mrb[3].mxu0  ;;  %v631_v12 = vsel %vm226_vm6, %v627_v10, -inf }
 0x3ab   :  { %632 = vmax.xlane.f32.xlu0 %v631_v12 }
 0x3ad   :  { %v792_v13 = vpop.f32.mrb[4].mxu0 }
 0x3ae   :  { %v2053_v14 = vpop.f32.mrb[5].mxu0  ;;  %v796_v15 = vsel %vm226_vm6, %v792_v13, -inf }
 0x3af   :  { %797 = vmax.xlane.f32.xlu0 %v796_v15 }
 0x3b1   :  { %v973_v16 = vpop.f32.mrb[6].mxu0 }
 0x3b2   :  { %v2063_v17 = vpop.f32.mrb[7].mxu0  ;;  %v977_v18 = vsel %vm226_vm6, %v973_v16, -inf }
 0x3b3   :  { %978 = vmax.xlane.f32.xlu0 %v977_v18 }
 0x3b5   :  { %v1138_v19 = vpop.f32.mrb[8].mxu0 }
 0x3b6   :  { %v2073_v20 = vpop.f32.mrb[9].mxu0  ;;  %v1142_v21 = vsel %vm226_vm6, %v1138_v19, -inf }
 0x3b7   :  { %1143 = vmax.xlane.f32.xlu1 %v1142_v21 }
 0x3b9   :  { %v1303_v22 = vpop.f32.mrb[10].mxu0 }
 0x3ba   :  { %v2083_v23 = vpop.f32.mrb[11].mxu0  ;;  %v1307_v24 = vsel %vm226_vm6, %v1303_v22, -inf }
 0x3bb   :  { %1308 = vmax.xlane.f32.xlu0 %v1307_v24 }
 0x3bd   :  { %v2517_v25 = vpop.f32.mrb[12].mxu0 }
 0x3be   :  { %v2093_v26 = vpop.f32.mrb[13].mxu0  ;;  %v1472_v27 = vsel %vm226_vm6, %v2517_v25, -inf }
 0x3c8   :  { %312 = vrot.lane.b32.xlu1 %v2453_v50, %s2357_s27 }
 0x3ec   :  { %1473 = vmax.xlane.f32.xlu1 %v1472_v27 }
 0x3fd   :  { %642 = vrot.lane.b32.xlu1 %v2453_v50, %s2358_s28 }
 0x401   :  { %807 = vrot.lane.b32.xlu1 %v2453_v50, %s2359_s29 }
 0x405   :  { %988 = vrot.lane.b32.xlu1 %v2461_v51, %s2357_s27 }
 0x430   :  { %v303_v28 = vpop.xlane.xlu0 %302 }
 0x431   :  { %v304_v29 = vsub.f32 %v297_v4, %v303_v28  ;;  %v468_v30 = vpop.xlane.xlu1 %467 }
 0x432   :  { %v469_v31 = vsub.f32 %v462_v6, %v468_v30 }
 0x433   :  { %v305_v32 = vmul.f32 1.442695, %v304_v29 }
 0x434   :  { %v470_v33 = vmul.f32 1.442695, %v469_v31 }
 0x435   :  { %2209 = vpow2.f32 %v305_v32 }
 0x436   :  { %2211 = vpow2.f32 %v470_v33 }
 0x438   :  { %v633_v34 = vpop.xlane.xlu0 %632 }
 0x439   :  { %v634_v47 = vsub.f32 %v627_v10, %v633_v34 }
 0x43b   :  { %v635_v49 = vmul.f32 1.442695, %v634_v47 }
 0x43c   :  { %v798_v35 = vpop.xlane.xlu0 %797 }
 0x43d   :  { %v799_v36 = vsub.f32 %v792_v13, %v798_v35 }
 0x43f   :  { %v2210_v37 = vpop.eup %2209  ;;  %v800_v38 = vmul.f32 1.442695, %v799_v36 }
 0x440   :  { %v2527_v39 = vpop.eup %2211  ;;  %v307_v40 = vsel %vm226_vm6, %v2210_v37, 0.0  ;;  %v979_v48 = vpop.xlane.xlu0 %978 }
 0x441   :  { %2213 = vpow2.f32 %v800_v38  ;;  %308 = vadd.xlane.f32.xlu0 %v307_v40  ;;  %v472_v41 = vsel %vm226_vm6, %v2527_v39, 0.0  ;;  %v980_v52 = vsub.f32 %v973_v16, %v979_v48 }
 0x442   :  { %473 = vadd.xlane.f32.xlu1 %v472_v41  ;;  %2215 = vpow2.f32 %v635_v49  ;;  %v71_v49 = vld [vmem:[#allocation7 + $0x38] sm:$0xff] }
 0x443   :  { %v981_v54 = vmul.f32 1.442695, %v980_v52 }
 0x444   :  { %v1144_v42 = vpop.xlane.xlu1 %1143 }
 0x445   :  { %2217 = vpow2.f32 %v981_v54  ;;  %v1145_v56 = vsub.f32 %v1138_v19, %v1144_v42 }
 0x447   :  { %v1146_v58 = vmul.f32 1.442695, %v1145_v56 }
 0x448   :  { %v313_v43 = vpop.permute.xlu1 %312  ;;  %v1309_v53 = vpop.xlane.xlu0 %1308 }
 0x449   :  { %2025 = vmatpush3.msra.mxu1 %v313_v43  ;;  %v1310_v55 = vsub.f32 %v1303_v22, %v1309_v53  ;;  %v68_v43 = vld [vmem:[#allocation7 + $0x20] sm:$0xff] }
 0x44a   :  { %2034 = vmatprep.subr.mxu1 %v2348_v46 }
 0x44b   :  { %v2533_v44 = vpop.eup %2213  ;;  %v1311_v57 = vmul.f32 1.442695, %v1310_v55 }
 0x44c   :  { %v802_v45 = vsel %vm226_vm6, %v2533_v44, 0.0  ;;  %v2216_v59 = vpop.eup %2215 }
 0x44d   :  { %803 = vadd.xlane.f32.xlu1 %v802_v45  ;;  %2219 = vpow2.f32 %v1311_v57  ;;  %v637_v60 = vsel %vm226_vm6, %v2216_v59, 0.0 }
 0x44e   :  { %2221 = vpow2.f32 %v1146_v58 }
 0x457   :  { %477 = vrot.lane.b32.xlu0 %v2453_v50, %s2360_s30  ;;  %v2218_v50 = vpop.eup %2217 }
 0x458   :  { %v983_v62 = vsel %vm226_vm6, %v2218_v50, 0.0  ;;  %v2541_v63 = vpop.eup %2219 }
 0x459   :  { %v1313_v4 = vsel %vm226_vm6, %v2541_v63, 0.0  ;;  %v2222_v5 = vpop.eup %2221 }
 0x45a   :  { %v1148_v6 = vsel %vm226_vm6, %v2222_v5, 0.0 }
 0x45e   :  { %1153 = vrot.lane.b32.xlu1 %v2461_v51, %s2360_s30 }
 0x476   :  { %638 = vadd.xlane.f32.xlu0 %v637_v60 }
 0x479   :  { %v1474_v61 = vpop.xlane.xlu1 %1473 }
 0x47a   :  { %v1475_v2 = vsub.f32 %v2517_v25, %v1474_v61  ;;  %984 = vadd.xlane.f32.xlu0 %v983_v62 }
 0x47c   :  { %v1476_v3 = vmul.f32 1.442695, %v1475_v2 }
 0x47d   :  { %v643_v9 = vpop.permute.xlu1 %642 }
 0x47e   :  { %2223 = vpow2.f32 %v1476_v3  ;;  %1314 = vadd.xlane.f32.xlu0 %v1313_v4 }
 0x481   :  { %v808_v10 = vpop.permute.xlu1 %807 }
 0x482   :  { %1149 = vadd.xlane.f32.xlu1 %v1148_v6 }
 0x485   :  { %v989_v11 = vpop.permute.xlu1 %988 }
 0x488   :  { %v2547_v7 = vpop.eup %2223 }
 0x489   :  { %v1478_v8 = vsel %vm226_vm6, %v2547_v7, 0.0 }
 0x48a   :  { %1479 = vadd.xlane.f32.xlu0 %v1478_v8 }
 0x493   :  { %1483 = vrot.lane.b32.xlu1 %v2461_v51, %s2359_s29 }
 0x4a0   :  { %1318 = vrot.lane.b32.xlu0 %v2461_v51, %s2358_s28 }
 0x4ce   :  { %v309_v12 = vpop.xlane.xlu0 %308 }
 0x4cf   :  { %2225 = vrcp.f32 %v309_v12  ;;  %v474_v13 = vpop.xlane.xlu1 %473  ;;  %v1937_v12 = vld [vmem:[#allocation5 + $0x5] ss:$0 sm:$0xff] }
 0x4d0   :  { %2227 = vrcp.f32 %v474_v13 }
 0x4d2   :  { %v478_v17 = vpop.permute.xlu0 %477 }
 0x4d9   :  { %v2226_v14 = vpop.eup %2225 }
 0x4da   :  { %v311_v15 = vmul.f32 %v2226_v14, %v2210_v37  ;;  %v2228_v16 = vpop.eup %2227  ;;  %v804_v51 = vpop.xlane.xlu1 %803 }
 0x4db   :  { %v476_v18 = vmul.f32 %v2228_v16, %v2527_v39 }
 0x4dc   :  { %2027 = vmatmul.mubr.msk.f32.vlgmr.msra.gmra.mrb[4].mxu1 %vm226_vm6, %v311_v15 }
 0x4dd   :  { %2035 = vmatpush3.msra.mxu1 %v478_v17  ;;  %2036 = vmatprep.mubr.msk.f32.mxu1 %vm2349_vm5, %v2348_v46 }
 0x4de   :  { %2044 = vmatprep.subr.mxu1 %v2348_v46  ;;  %v1154_v21 = vpop.permute.xlu1 %1153 }
 0x4e0   :  { %2037 = vmatmul.mubr.msk.f32.vlgmr.msra.gmra.mrb[6].mxu1 %vm226_vm6, %v476_v18 }
 0x4e1   :  { %2045 = vmatpush3.msra.mxu1 %v643_v9  ;;  %2046 = vmatprep.mubr.msk.f32.mxu1 %vm2349_vm5, %v2348_v46 }
 0x4e2   :  { %2054 = vmatprep.subr.mxu1 %v2348_v46 }
 0x503   :  { %v639_v19 = vpop.xlane.xlu0 %638 }
 0x504   :  { %2229 = vrcp.f32 %v639_v19 }
 0x505   :  { %2231 = vrcp.f32 %v804_v51 }
 0x507   :  { %v985_v20 = vpop.xlane.xlu0 %984 }
 0x508   :  { %2233 = vrcp.f32 %v985_v20 }
 0x50b   :  { %v1315_v24 = vpop.xlane.xlu0 %1314 }
 0x50e   :  { %v2230_v22 = vpop.eup %2229 }
 0x50f   :  { %v641_v23 = vmul.f32 %v2230_v22, %v2216_v59  ;;  %v1150_v25 = vpop.xlane.xlu1 %1149  ;;  %v2232_v26 = vpop.eup %2231 }
 0x510   :  { %2235 = vrcp.f32 %v1150_v25  ;;  %v806_v27 = vmul.f32 %v2232_v26, %v2533_v44  ;;  %v69_v44 = vld [vmem:[#allocation7 + $0x28] sm:$0xff] }
 0x511   :  { %2047 = vmatmul.mubr.msk.f32.vlgmr.msra.gmra.mrb[8].mxu1 %vm226_vm6, %v641_v23  ;;  %2237 = vrcp.f32 %v1315_v24  ;;  %v2148_v47 = vpack.c.bf16 %v69_v44, %v68_v43 }
 0x512   :  { %2055 = vmatpush3.msra.mxu1 %v808_v10  ;;  %2056 = vmatprep.mubr.msk.f32.mxu1 %vm2349_vm5, %v2348_v46  ;;  %v2234_v28 = vpop.eup %2233 }
 0x513   :  { %2064 = vmatprep.subr.mxu1 %v2348_v46  ;;  %v987_v29 = vmul.f32 %v2234_v28, %v2218_v50  ;;  %v1484_v36 = vpop.permute.xlu1 %1483  ;;  %2149 = vmatprep.subr.bf16.mxu0 %v2148_v47  ;;  %v72_v28 = vld [vmem:[#allocation7 + $0x40] sm:$0xff] }
 0x514   :  { %2151 = vmatpush3.bf16.msra.mxu0 %v2148_v47 }
 0x515   :  { %2057 = vmatmul.mubr.msk.f32.vlgmr.msra.gmra.mrb[10].mxu1 %vm226_vm6, %v806_v27 }
 0x516   :  { %2065 = vmatpush3.msra.mxu1 %v989_v11  ;;  %2066 = vmatprep.mubr.msk.f32.mxu1 %vm2349_vm5, %v2348_v46 }
 0x517   :  { %v1480_v30 = vpop.xlane.xlu0 %1479  ;;  %2074 = vmatprep.subr.mxu1 %v2348_v46 }
 0x518   :  { %2239 = vrcp.f32 %v1480_v30  ;;  %v74_v30 = vld [vmem:[#allocation7 + $0x50] sm:$0xff] }
 0x519   :  { %2067 = vmatmul.mubr.msk.f32.vlgmr.msra.gmra.mrb[12].mxu1 %vm226_vm6, %v987_v29  ;;  %v73_v29 = vld [vmem:[#allocation7 + $0x48] sm:$0xff] }
 0x51a   :  { %v2236_v31 = vpop.eup %2235  ;;  %2075 = vmatpush3.msra.mxu1 %v1154_v21  ;;  %2076 = vmatprep.mubr.msk.f32.mxu1 %vm2349_vm5, %v2348_v46 }
 0x51b   :  { %v1152_v32 = vmul.f32 %v2236_v31, %v2222_v5  ;;  %v1319_v33 = vpop.permute.xlu0 %1318  ;;  %2084 = vmatprep.subr.mxu1 %v2348_v46  ;;  %v2238_v34 = vpop.eup %2237  ;;  %v2156_v31 = vpack.c.bf16 %v73_v29, %v72_v28 }
 0x51c   :  { %v1317_v35 = vmul.f32 %v2238_v34, %v2541_v63  ;;  %v76_v34 = vld [vmem:[#allocation7 + $0x60] sm:$0xff] }
 0x51d   :  { %2077 = vmatmul.mubr.msk.f32.vlgmr.msra.gmra.mrb[14].mxu1 %vm226_vm6, %v1152_v32  ;;  %v75_v32 = vld [vmem:[#allocation7 + $0x58] sm:$0xff] }
 0x51e   :  { %2085 = vmatpush3.msra.mxu1 %v1319_v33  ;;  %2086 = vmatprep.mubr.msk.f32.mxu1 %vm2349_vm5, %v2348_v46  ;;  %v2160_v33 = vpack.c.bf16 %v75_v32, %v74_v30 }
 0x51f   :  { %2094 = vmatprep.subr.mxu1 %v2348_v46 }
 0x521   :  { %2087 = vmatmul.mubr.msk.f32.vlgmr.msra.gmra.mrb[16].mxu1 %vm226_vm6, %v1317_v35  ;;  %v77_v35 = vld [vmem:[#allocation7 + $0x68] sm:$0xff] }
 0x522   :  { %v2240_v37 = vpop.eup %2239  ;;  %2095 = vmatpush3.msra.mxu1 %v1484_v36  ;;  %2096 = vmatprep.mubr.msk.f32.mxu1 %vm2349_vm5, %v2348_v46  ;;  %v70_v46 = vld [vmem:[#allocation7 + $0x30] sm:$0xff] }
 0x523   :  { %v1482_v38 = vmul.f32 %v2240_v37, %v2547_v7  ;;  %v2152_v53 = vpack.c.bf16 %v71_v49, %v70_v46  ;;  %2157 = vmatprep.subr.bf16.mxu1 %v2156_v31  ;;  %v78_v36 = vld [vmem:[#allocation7 + $0x70] sm:$0xff]  ;;  %v2164_v37 = vpack.c.bf16 %v77_v35, %v76_v34 }
 0x525   :  { %2097 = vmatmul.mubr.msk.f32.vlgmr.msra.gmra.mrb[18].mxu1 %vm226_vm6, %v1482_v38  ;;  %2153 = vmatprep.subr.bf16.mxu0 %v2152_v53  ;;  %v79_v38 = vld [vmem:[#allocation7 + $0x78] sm:$0xff] }
 0x526   :  { %2155 = vmatpush3.bf16.msra.mxu0 %v2152_v53  ;;  %2159 = vmatpush3.bf16.msra.mxu1 %v2156_v31 }
 0x527   :  { %2161 = vmatprep.subr.bf16.mxu1 %v2160_v33  ;;  %2165 = vmatprep.subr.bf16.mxu0 %v2164_v37 }
 0x52a   :  { %2163 = vmatpush3.bf16.msra.mxu1 %v2160_v33 }
 0x5af   :  { %v384_v39 = vpop.f32.mrb[4].mxu1 }
 0x5b0   :  { %v2028_v40 = vpop.f32.mrb[5].mxu1 }
 0x5b1   :  { %v80_v40 = vld [vmem:[#allocation7 + $0x80] sm:$0xff] }
 0x5b3   :  { %v549_v41 = vpop.f32.mrb[6].mxu1 }
 0x5b4   :  { %884 = vrot.lane.b32.xlu0 %v549_v41, %s2346_s7  ;;  %v2038_v42 = vpop.f32.mrb[7].mxu1  ;;  %v81_v41 = vld [vmem:[#allocation7 + $0x88] sm:$0xff] }
 0x5b5   :  { %v2172_v42 = vpack.c.bf16 %v81_v41, %v80_v40 }
 0x5e4   :  { %v714_v45 = vpop.f32.mrb[8].mxu1 }
 0x5e5   :  { %888 = vrot.lane.b32.xlu1 %v714_v45, %s2361_s4  ;;  %v2048_v48 = vpop.f32.mrb[9].mxu1 }
 0x5e8   :  { %v879_v52 = vpop.f32.mrb[10].mxu1 }
 0x5e9   :  { %892 = vrot.lane.b32.xlu1 %v879_v52, %s2362_s5  ;;  %v2058_v54 = vpop.f32.mrb[11].mxu1 }
 0x5ec   :  { %v1060_v55 = vpop.f32.mrb[12].mxu1 }
 0x5ed   :  { %v2068_v56 = vpop.f32.mrb[13].mxu1 }
 0x5f0   :  { %v1225_v57 = vpop.f32.mrb[14].mxu1 }
 0x5f1   :  { %1560 = vrot.lane.b32.xlu0 %v1225_v57, %s2346_s7  ;;  %v2078_v58 = vpop.f32.mrb[15].mxu1 }
 0x5f4   :  { %v1390_v59 = vpop.f32.mrb[16].mxu1 }
 0x5f5   :  { %1564 = vrot.lane.b32.xlu0 %v1390_v59, %s2361_s4  ;;  %v2088_v60 = vpop.f32.mrb[17].mxu1 }
 0x5f8   :  { %v1555_v50 = vpop.f32.mrb[18].mxu1 }
 0x5f9   :  { %1568 = vrot.lane.b32.xlu1 %v1555_v50, %s2362_s5  ;;  %v2098_v61 = vpop.f32.mrb[19].mxu1  ;;  %v1940_v50 = vld [vmem:[#allocation5 + $0x2] ss:$0 sm:$0xff] }
 0x626   :  { %v885_v62 = vpop.permute.xlu0 %884 }
 0x627   :  { %v895_v2 = vsel %vm226_vm6, %v384_v39, %v885_v62  ;;  %v2168_v39 = vpack.c.bf16 %v79_v38, %v78_v36 }
 0x657   :  { %v889_v63 = vpop.permute.xlu1 %888 }
 0x658   :  { %v897_v3 = vsel %vm896_vm7, %v895_v2, %v889_v63  ;;  %v1941_v63 = vld [vmem:[#allocation5 + $0x3] ss:$0 sm:$0xff] }
 0x65b   :  { %v893_v4 = vpop.permute.xlu1 %892 }
 0x65c   :  { %v899_v5 = vsel %vm898_vm8, %v897_v3, %v893_v4 }
 0x65d   :  { %2107 = vmatprep.mubr.msk.f32.mxu0 %vm84_vm0, %v899_v5 }
 0x663   :  { %v1561_v6 = vpop.permute.xlu0 %1560 }
 0x664   :  { %v1571_v8 = vsel %vm226_vm6, %v1060_v55, %v1561_v6 }
 0x667   :  { %v1565_v7 = vpop.permute.xlu0 %1564 }
 0x668   :  { %v1572_v9 = vsel %vm896_vm7, %v1571_v8, %v1565_v7  ;;  %v82_v8 = vld [vmem:[#allocation7 + $0x90] sm:$0xff] }
 0x66b   :  { %v1569_v10 = vpop.permute.xlu1 %1568 }
 0x66c   :  { %v1573_v11 = vsel %vm898_vm8, %v1572_v9, %v1569_v10  ;;  %v83_v9 = vld [vmem:[#allocation7 + $0x98] sm:$0xff] }
 0x66d   :  { %2108 = vmatmul.mubr.msk.f32.vlgmr.msra.gmra.mrb[14].mxu0 %vm84_vm0, %v1573_v11  ;;  %v2176_v10 = vpack.c.bf16 %v83_v9, %v82_v8  ;;  %v1942_v11 = vld [vmem:[#allocation5 + $0x6] ss:$0 sm:$0xff] }
 0x66e   :  { %2167 = vmatpush3.bf16.msra.mxu0 %v2164_v37 }
 0x66f   :  { %2169 = vmatprep.subr.bf16.mxu0 %v2168_v39 }
 0x672   :  { %2171 = vmatpush3.bf16.msra.mxu0 %v2168_v39 }
 0x673   :  { %2173 = vmatprep.subr.bf16.mxu0 %v2172_v42 }
 0x676   :  { %2175 = vmatpush3.bf16.msra.mxu0 %v2172_v42 }
 0x677   :  { %2177 = vmatprep.subr.bf16.mxu0 %v2176_v10 }
 0x67a   :  { %2179 = vmatpush3.bf16.msra.mxu0 %v2176_v10 }
 0x740   :  { %v2109_v13 = vpop.f32.mrb[14].mxu0 }
 0x741   :  { %v1656_v14 = vadd.f32 %v2109_v13, %v1937_v12  ;;  %v1650_v15 = vpop.f32.mrb[15].mxu0 }
 0x742   :  { %v1651_v16 = vadd.f32 %v1937_v12, %v1650_v15 }
 0x743   :  { %v2594_v17 = vadd.f32 %v1656_v14, %v2435_v1 }
 0x744   :  { %v2597_v18 = vadd.f32 %v1651_v16, %v2433_v0 }
 0x745   :  { %v1664_v51 = vsel %vm84_vm0, %v2594_v17, 0.0 }
 0x746   :  { %1665 = vadd.xlane.f32.xlu1 %v1664_v51  ;;  %v1661_v19 = vsel %vm84_vm0, %v2597_v18, 0.0 }
 0x747   :  { %1662 = vadd.xlane.f32.xlu0 %v1661_v19  ;;  %v1945_v19 = vld [vmem:[#allocation5 + $0x7] ss:$0 sm:$0xff] }
 0x7d3   :  { %v1666_v20 = vpop.xlane.xlu1 %1665 }
 0x7d4   :  { %v1668_v21 = vmul.f32 0.03125, %v1666_v20  ;;  %v1663_v22 = vpop.xlane.xlu0 %1662 }
 0x7d5   :  { %v1667_v23 = vmul.f32 0.03125, %v1663_v22 }
 0x7d6   :  { %v1670_v24 = vsub.f32 %v2594_v17, %v1668_v21 }
 0x7d7   :  { %v1669_v1 = vsub.f32 %v2597_v18, %v1667_v23 }
 0x7d8   :  { %v1672_v26 = vmul.f32 %v1670_v24, %v1670_v24  ;;  %v1700_v3 = vmul.f32 %v1940_v50, %v1670_v24 }
 0x7d9   :  { %v1671_v25 = vmul.f32 %v1669_v1, %v1669_v1  ;;  %v1699_v61 = vmul.f32 %v1940_v50, %v1669_v1 }
 0x7da   :  { %v1676_v27 = vsel %vm84_vm0, %v1672_v26, 0.0 }
 0x7db   :  { %v1673_v0 = vsel %vm84_vm0, %v1671_v25, 0.0 }
 0x7dc   :  { %1674 = vadd.xlane.f32.xlu0 %v1673_v0 }
 0x7e0   :  { %1677 = vadd.xlane.f32.xlu0 %v1676_v27 }
 0x869   :  { %v1675_v43 = vpop.xlane.xlu0 %1674 }
 0x86a   :  { %v1679_v44 = vmul.f32 0.032258064, %v1675_v43 }
 0x86c   :  { %2241 = vrsqrt.f32 %v1679_v44  ;;  %vm1683_vm9 = vcmp.eq.f32.partialorder %v1679_v44, inf  ;;  %v1686_v49 = vand.u32 2147483648, %v1679_v44  ;;  %vm1685_vm10 = vcmp.eq.f32.partialorder %v1679_v44, 0.0 }
 0x86d   :  { %v1678_v45 = vpop.xlane.xlu0 %1677 }
 0x86e   :  { %v1680_v47 = vmul.f32 0.032258064, %v1678_v45 }
 0x870   :  { %2243 = vrsqrt.f32 %v1680_v47  ;;  %vm1690_vm11 = vcmp.eq.f32.partialorder %v1680_v47, inf  ;;  %v1693_v57 = vand.u32 2147483648, %v1680_v47  ;;  %vm1692_vm12 = vcmp.eq.f32.partialorder %v1680_v47, 0.0 }
 0x876   :  { %v2242_v48 = vpop.eup %2241 }
 0x877   :  { %v1682_v46 = vmul.f32 %v2242_v48, %v1679_v44 }
 0x879   :  { %v1684_v52 = vsel %vm1683_vm9, %v1679_v44, %v1682_v46 }
 0x87a   :  { %v2244_v53 = vpop.eup %2243  ;;  %v1687_v54 = vsel %vm1685_vm10, %v1686_v49, %v1684_v52 }
 0x87b   :  { %v1689_v55 = vmul.f32 %v2244_v53, %v1680_v47  ;;  %v1701_v56 = vadd.f32 1e-06, %v1687_v54 }
 0x87d   :  { %v1691_v58 = vsel %vm1690_vm11, %v1680_v47, %v1689_v55  ;;  %2245 = vrcp.f32 %v1701_v56 }
 0x87e   :  { %v1694_v59 = vsel %vm1692_vm12, %v1693_v57, %v1691_v58 }
 0x87f   :  { %v1702_v60 = vadd.f32 1e-06, %v1694_v59 }
 0x881   :  { %2247 = vrcp.f32 %v1702_v60 }
 0x887   :  { %v2246_v62 = vpop.eup %2245 }
 0x888   :  { %v1704_v2 = vmul.f32 %v2246_v62, %v1699_v61 }
 0x88a   :  { %v1711_v4 = vadd.f32 %v1941_v63, %v1704_v2 }
 0x88b   :  { %v2248_v5 = vpop.eup %2247 }
 0x88c   :  { %v1706_v6 = vmul.f32 %v2248_v5, %v1700_v3  ;;  %2118 = vmatprep.mubr.msk.f32.mxu1 %vm84_vm0, %v1711_v4 }
 0x88e   :  { %v1712_v7 = vadd.f32 %v1941_v63, %v1706_v6 }
 0x890   :  { %2119 = vmatmul.mubr.msk.f32.vlgmr.msra.gmra.mrb[20].mxu1 %vm84_vm0, %v1712_v7 }
 0x963   :  { %v2120_v12 = vpop.f32.mrb[20].mxu1 }
 0x964   :  { %v1795_v13 = vadd.f32 %v2120_v12, %v1942_v11  ;;  %v1789_v14 = vpop.f32.mrb[21].mxu1 }
 0x965   :  { %v1790_v15 = vadd.f32 %v1942_v11, %v1789_v14 }
 0x966   :  { %v1799_v51 = vmax.f32 %v1795_v13, 0.0 }
 0x967   :  { %v1798_v16 = vmax.f32 %v1790_v15, 0.0 }
 0x969   :  { %2137 = vmatprep.mubr.msk.f32.mxu0 %vm1804_vm13, %v1798_v16 }
 0x96a   :  { %2138 = vmatmul.mubr.msk.f32.vlgmr.msra.gmra.mrb[16].mxu0 %vm1804_vm13, %v1799_v51 }
 0xa3d   :  { %v2139_v20 = vpop.f32.mrb[16].mxu0 }
 0xa3e   :  { %v1883_v21 = vadd.f32 %v2139_v20, %v1945_v19  ;;  %v1877_v22 = vpop.f32.mrb[17].mxu0 }
 0xa3f   :  { %v1878_v23 = vadd.f32 %v1945_v19, %v1877_v22 }
 0xa40   :  { %v1887_v24 = vadd.f32 %v1883_v21, %v2594_v17 }
 0xa41   :  { %v1886_v1 = vadd.f32 %v1878_v23, %v2597_v18 }
 0xa42   :  { %1889 = vst.msk [vmem:[#allocation8 + $0x8] sm:$0xff] %vm84_vm0, %v1887_v24 }
 0xa43   :  { %1888 = vst.msk [vmem:[#allocation8] sm:$0xff] %vm84_vm0, %v1886_v1 }
 0xa44   :  { %2326 = shalt.err (!%p2323_p0)
}
 0xa45   :  { %s2327_s12 = scalar_lea.hbm %s2631_s3, 256 }
 0xa46   :  { %p2328_p1 = scmp.ne.s32.totalorder %s2631_s3, %s2327_s12  ;;  %p2331_p2 = scmp.lt.u32.totalorder %s2327_s12, %s2631_s3 }
 0xa48   :  { %p2333_p3 = pnand %p2331_p2, %p2328_p1 }
 0xa4a   :  { %2336 = shalt.err (!%p2333_p3)
}
 0xa4b   :  { %1901 = dma.vmem_to_hbm [thread:$0]  %s1896_s8, 256, %s2631_s3, [#allocation4], %s2345_s1, %s2345_s1, %s2346_s7  }
 0xa4c   :  { %2341 = dma.done.wait [#allocation4], 256  }
 0xa4d   :  { %2342 = vsyncadd [#allocation4], 4294967040 }
 0xa4e   :  { %1905 = vsyncpa [#allocation3], 1 }
 0xa4f   :  { %1906 = vsyncpa [#allocation6], 1 }
 0xa50   :  { %1907 = vsyncpa [#allocation4], 1 }

</bundles_post_ra>
